<compile_context>
chip_gen: v7x
topology: tpu7x:2x2x1
jax: 0.10.0
libtpu: 0.0.40
codegen_flags: <defaults>
</compile_context>

<pallas_src>
import functools

import jax
import jax.numpy as jnp
from jax.experimental import pallas as pl
from jax.experimental.pallas import tpu as pltpu


_NEG_BIG = float(jnp.finfo(jnp.float32).min)


def _maxsim_kernel(q_ref, d_ref, o_ref, qn_ref, acc_ref, *,
                   mm_dtype, tile_len, doc_len, mask_tail):
    """One (batch-block b, doc-token-tile k) grid step.

    q_ref:   (BB, Q, D)   query tokens for this batch block (resident over k)
    d_ref:   (BB, TL, D)  doc-token tile for this batch block
    o_ref:   (1, 1, BB)   per-pair ColBERT scores (written at the last k)
    qn_ref:  (BB, Q, D)   scratch: L2-normalized queries in matmul dtype
    acc_ref: (BB, Q)      scratch: running max over doc tokens (f32)
    """
    k = pl.program_id(1)
    eps2 = jnp.float32(1e-24)  # == (F.normalize eps = 1e-12) ** 2

    @pl.when(k == 0)
    def _init():
        # Normalize the (resident) query block once per batch block.
        q = q_ref[...]
        qf = q.astype(jnp.float32)
        inv_q = jax.lax.rsqrt(
            jnp.maximum(jnp.sum(qf * qf, axis=-1, keepdims=True), eps2))
        qn_ref[...] = q.astype(mm_dtype) * inv_q.astype(mm_dtype)
        acc_ref[...] = jnp.full(acc_ref.shape, _NEG_BIG, acc_ref.dtype)

    # Normalize this doc-token tile: squared-norm reduction in f32, scale
    # applied to the original-dtype operand (no f32 copy materialized).
    d = d_ref[...]
    df = d.astype(jnp.float32)
    inv_d = jax.lax.rsqrt(
        jnp.maximum(jnp.sum(df * df, axis=-1, keepdims=True), eps2))
    dn = d.astype(mm_dtype) * inv_d.astype(mm_dtype)

    # Batched MXU matmul: (BB, Q, D) x (BB, TL, D) -> (BB, Q, TL), f32 accum.
    sim = jax.lax.dot_general(
        qn_ref[...], dn,
        dimension_numbers=(((2,), (2,)), ((0,), (0,))),
        preferred_element_type=jnp.float32)

    if mask_tail:
        # In-kernel iota mask for doc-length padding (no HBM mask array).
        col = k * tile_len + jax.lax.broadcasted_iota(jnp.int32, sim.shape, 2)
        sim = jnp.where(col < doc_len, sim, _NEG_BIG)

    # Online running max over doc-token tiles.
    acc_ref[...] = jnp.maximum(acc_ref[...], jnp.max(sim, axis=-1))

    @pl.when(k == pl.num_programs(1) - 1)
    def _finalize():
        # Sum of per-query-token maxima -> one score per pair in this block.
        o_ref[...] = jnp.sum(acc_ref[...], axis=-1)[None, None, :]


def _round_up(x, m):
    return ((x + m - 1) // m) * m


def _cdiv(a, b):
    return (a + b - 1) // b


def _vmem_capacity_bytes():
    """Generation-aware VMEM query (v5e/v6e: 128 MiB, v7x: 64 MiB per core)."""
    try:
        return int(pltpu.get_tpu_info().vmem_capacity_bytes)
    except Exception:
        return 64 << 20  # conservative fallback = v7x physical VMEM


def _pick_blocks(n_way, q_len, doc_len, emb_dim, in_itemsize, mm_itemsize,
                 budget_bytes):
    """Pick (pairs-per-block, doc-token tile) maximizing per-step work under
    the VMEM budget.  The doc-token tile is a multiple of 8 (sublane rule)."""
    tile_len = max(8, min(_round_up(doc_len, 8), 512))

    def footprint(bb, tl):
        q_io = 2 * bb * q_len * emb_dim * in_itemsize      # double-buffered
        d_io = 2 * bb * tl * emb_dim * in_itemsize         # double-buffered
        qn = bb * q_len * emb_dim * mm_itemsize            # scratch
        acc = bb * q_len * 4                               # scratch
        sim = bb * q_len * tl * 4                          # f32 temporaries
        dno = bb * tl * emb_dim * (mm_itemsize + 4)
        return q_io + d_io + qn + acc + sim + dno

    bb = max(1, min(n_way, 128))   # <= 128 keeps the score row one vreg wide
    while bb > 1 and footprint(bb, tile_len) > budget_bytes:
        bb = max(1, bb // 2)
    while tile_len > 8 and footprint(bb, tile_len) > budget_bytes:
        tile_len = max(8, _round_up(tile_len // 2, 8))
    # Re-balance so padded (wasted) pairs are minimized for this block count.
    bb = _cdiv(n_way, _cdiv(n_way, bb))
    return bb, tile_len


def maxsim(query_embeddings, doc_embeddings, *, use_bf16_matmul=False):
    """ColBERT MaxSim: query [n_way, Q, D], doc [n_way, L, D] -> [n_way] f32."""
    n_way, q_len, emb_dim = query_embeddings.shape
    n_d, doc_len, d_dim = doc_embeddings.shape
    assert n_d == n_way and d_dim == emb_dim

    in_dtype = query_embeddings.dtype
    # bf16 inputs keep bf16 MXU operands (f32 accumulation).  For f32 inputs
    # the bf16 MXU path is opt-in (validate against tolerance before enabling).
    mm_dtype = (jnp.bfloat16
                if (in_dtype == jnp.bfloat16 or use_bf16_matmul)
                else jnp.float32)

    vmem_cap = _vmem_capacity_bytes()
    budget = min(vmem_cap // 4, 48 << 20)
    bb, tile_len = _pick_blocks(
        n_way, q_len, doc_len, emb_dim,
        jnp.dtype(in_dtype).itemsize, jnp.dtype(mm_dtype).itemsize, budget)

    num_blocks = _cdiv(n_way, bb)
    n_pad = num_blocks * bb
    num_tiles = _cdiv(doc_len, tile_len)
    l_pad = num_tiles * tile_len

    q = query_embeddings
    d = doc_embeddings
    if n_pad != n_way:
        q = jnp.pad(q, ((0, n_pad - n_way), (0, 0), (0, 0)))
        d = jnp.pad(d, ((0, n_pad - n_way), (0, 0), (0, 0)))
    if l_pad != doc_len:
        d = jnp.pad(d, ((0, 0), (0, l_pad - doc_len), (0, 0)))

    kernel = functools.partial(
        _maxsim_kernel, mm_dtype=mm_dtype, tile_len=tile_len,
        doc_len=doc_len, mask_tail=(l_pad != doc_len))

    out = pl.pallas_call(
        kernel,
        out_shape=jax.ShapeDtypeStruct((num_blocks, 1, bb), jnp.float32),
        grid_spec=pltpu.PrefetchScalarGridSpec(
            num_scalar_prefetch=0,
            grid=(num_blocks, num_tiles),
            in_specs=[
                # Query block: resident across the doc-tile axis (fetched once
                # per batch block).
                pl.BlockSpec((bb, q_len, emb_dim), lambda b, k: (b, 0, 0)),
                # Doc-token tile, streamed along the "arbitrary" axis.
                pl.BlockSpec((bb, tile_len, emb_dim), lambda b, k: (b, k, 0)),
            ],
            out_specs=pl.BlockSpec((1, 1, bb), lambda b, k: (b, 0, 0)),
            scratch_shapes=[
                pltpu.VMEM((bb, q_len, emb_dim), mm_dtype),  # normalized queries
                pltpu.VMEM((bb, q_len), jnp.float32),        # running max
            ],
        ),
        compiler_params=pltpu.CompilerParams(
            # Note: on v7x, pltpu.CORE_PARALLEL on the batch-block axis would
            # shard blocks across both TensorCores; kept as "parallel" here
            # for portability across v5e/v6e/v7x.
            dimension_semantics=("parallel", "arbitrary"),
            vmem_limit_bytes=int(min(max(vmem_cap * 3 // 4, 32 << 20),
                                     100 << 20)),
        ),
    )(q, d)

    return out[:, 0, :].reshape(-1)[:n_way]


def maxsim_ref(q, d):
    """Pure-JAX reference mirroring the PyTorch module."""
    eps = 1e-12
    qn = q / jnp.maximum(jnp.linalg.norm(q, axis=-1, keepdims=True), eps)
    dn = d / jnp.maximum(jnp.linalg.norm(d, axis=-1, keepdims=True), eps)
    sim = jnp.einsum("bqd,bld->bql", qn, dn)
    return jnp.sum(jnp.max(sim, axis=-1), axis=-1)


if __name__ == "__main__":
    key = jax.random.PRNGKey(0)
    kq, kd = jax.random.split(key)

    n_way, query_len, document_len, emb_dim = 2, 8, 16, 32
    query = jax.random.normal(kq, (n_way, query_len, emb_dim), jnp.float32)
    doc = jax.random.normal(kd, (n_way, document_len, emb_dim), jnp.float32)

    scores = maxsim(query, doc)
    jax.block_until_ready(scores)

    ref = maxsim_ref(query, doc)
    assert scores.shape == (n_way,)
    assert jnp.allclose(scores, ref, atol=1e-4, rtol=1e-4), (scores, ref)

    print("KERNEL_OK")
</pallas_src>

<mosaic_0001>
module attributes {stable_mosaic.version = 11 : i64} {
  func.func @_maxsim_kernel(%arg0: i32, %arg1: i32, %arg2: memref<2x8x32xf32, #tpu.memory_space<vmem>>, %arg3: memref<2x16x32xf32, #tpu.memory_space<vmem>>, %arg4: memref<1x1x2xf32, #tpu.memory_space<vmem>>, %arg5: memref<2x8x32xf32, #tpu.memory_space<vmem>>, %arg6: memref<2x8xf32, #tpu.memory_space<vmem>>) attributes {dimension_semantics = [#tpu.dimension_semantics<parallel>, #tpu.dimension_semantics<arbitrary>], iteration_bounds = array<i64: 1, 1>, scalar_prefetch = 0 : i64, scratch_operands = 2 : i64, tpu.core_type = #tpu.core_type<tc>, window_params = [{transform_indices = @transform_0, window_bounds = array<i64: 2, 8, 32>}, {transform_indices = @transform_1, window_bounds = array<i64: 2, 16, 32>}, {transform_indices = @transform_2, window_bounds = array<i64: 1, 1, 2>}]} {
    %c0_i32 = arith.constant 0 : i32
    %0 = arith.cmpi eq, %arg1, %c0_i32 : i32
    %1 = arith.extui %0 : i1 to i32
    %cst = arith.constant 1.000000e-24 : f32
    %c0_i32_0 = arith.constant 0 : i32
    %2 = arith.cmpi ne, %1, %c0_i32_0 : i32
    scf.if %2 {
      %c0_16 = arith.constant 0 : index
      %c0_17 = arith.constant 0 : index
      %c0_18 = arith.constant 0 : index
      %21 = vector.load %arg2[%c0_16, %c0_17, %c0_18] : memref<2x8x32xf32, #tpu.memory_space<vmem>>, vector<2x8x32xf32>
      %22 = arith.mulf %21, %21 : vector<2x8x32xf32>
      %cst_19 = arith.constant dense<0.000000e+00> : vector<2x8xf32>
      %23 = vector.multi_reduction <add>, %22, %cst_19 [2] : vector<2x8x32xf32> to vector<2x8xf32>
      %24 = vector.shape_cast %23 : vector<2x8xf32> to vector<2x8x1xf32>
      %25 = vector.broadcast %cst : f32 to vector<2x8x1xf32>
      %26 = arith.maximumf %24, %25 : vector<2x8x1xf32>
      %27 = math.rsqrt %26 : vector<2x8x1xf32>
      %28 = vector.broadcast %27 : vector<2x8x1xf32> to vector<2x8x32xf32>
      %29 = arith.mulf %21, %28 : vector<2x8x32xf32>
      %c0_20 = arith.constant 0 : index
      %c0_21 = arith.constant 0 : index
      %c0_22 = arith.constant 0 : index
      %30 = vector.load %arg5[%c0_20, %c0_21, %c0_22] : memref<2x8x32xf32, #tpu.memory_space<vmem>>, vector<2x8x32xf32>
      tpu.vector_store %arg5[%c0_20, %c0_21, %c0_22], %29 {strides = array<i32>} : memref<2x8x32xf32, #tpu.memory_space<vmem>>, vector<2x8x32xf32>,
      %cst_23 = arith.constant -3.40282347E+38 : f32
      %31 = vector.broadcast %cst_23 : f32 to vector<2x8xf32>
      %c0_24 = arith.constant 0 : index
      %c0_25 = arith.constant 0 : index
      %32 = vector.load %arg6[%c0_24, %c0_25] : memref<2x8xf32, #tpu.memory_space<vmem>>, vector<2x8xf32>
      tpu.vector_store %arg6[%c0_24, %c0_25], %31 {strides = array<i32>} : memref<2x8xf32, #tpu.memory_space<vmem>>, vector<2x8xf32>,
    } else {
    }
    %c0 = arith.constant 0 : index
    %c0_1 = arith.constant 0 : index
    %c0_2 = arith.constant 0 : index
    %3 = vector.load %arg3[%c0, %c0_1, %c0_2] : memref<2x16x32xf32, #tpu.memory_space<vmem>>, vector<2x16x32xf32>
    %4 = arith.mulf %3, %3 : vector<2x16x32xf32>
    %cst_3 = arith.constant dense<0.000000e+00> : vector<2x16xf32>
    %5 = vector.multi_reduction <add>, %4, %cst_3 [2] : vector<2x16x32xf32> to vector<2x16xf32>
    %6 = vector.shape_cast %5 : vector<2x16xf32> to vector<2x16x1xf32>
    %cst_4 = arith.constant 1.000000e-24 : f32
    %7 = vector.broadcast %cst_4 : f32 to vector<2x16x1xf32>
    %8 = arith.maximumf %6, %7 : vector<2x16x1xf32>
    %9 = math.rsqrt %8 : vector<2x16x1xf32>
    %10 = vector.broadcast %9 : vector<2x16x1xf32> to vector<2x16x32xf32>
    %11 = arith.mulf %3, %10 : vector<2x16x32xf32>
    %c0_5 = arith.constant 0 : index
    %c0_6 = arith.constant 0 : index
    %c0_7 = arith.constant 0 : index
    %12 = vector.load %arg5[%c0_5, %c0_6, %c0_7] : memref<2x8x32xf32, #tpu.memory_space<vmem>>, vector<2x8x32xf32>
    %cst_8 = arith.constant dense<0.000000e+00> : vector<2x8x16xf32>
    %13 = tpu.matmul %12, %11, %cst_8 {dimension_numbers = #tpu.dot_dimension_numbers<[2], [2], [1], [1], [0, 0, 0, 1, 1, 1], [0], [0]>} : vector<2x8x32xf32>, vector<2x16x32xf32>, vector<2x8x16xf32> -> vector<2x8x16xf32>
    %c0_9 = arith.constant 0 : index
    %c0_10 = arith.constant 0 : index
    %14 = vector.load %arg6[%c0_9, %c0_10] : memref<2x8xf32, #tpu.memory_space<vmem>>, vector<2x8xf32>
    %cst_11 = arith.constant dense<0xFF800000> : vector<2x8xf32>
    %15 = vector.multi_reduction <maximumf>, %13, %cst_11 [2] : vector<2x8x16xf32> to vector<2x8xf32>
    %16 = arith.maximumf %14, %15 : vector<2x8xf32>
    %c0_12 = arith.constant 0 : index
    %c0_13 = arith.constant 0 : index
    %17 = vector.load %arg6[%c0_12, %c0_13] : memref<2x8xf32, #tpu.memory_space<vmem>>, vector<2x8xf32>
    tpu.vector_store %arg6[%c0_12, %c0_13], %16 {strides = array<i32>} : memref<2x8xf32, #tpu.memory_space<vmem>>, vector<2x8xf32>,
    %c0_i32_14 = arith.constant 0 : i32
    %18 = arith.cmpi eq, %arg1, %c0_i32_14 : i32
    %19 = arith.extui %18 : i1 to i32
    %c0_i32_15 = arith.constant 0 : i32
    %20 = arith.cmpi ne, %19, %c0_i32_15 : i32
    scf.if %20 {
      %c0_16 = arith.constant 0 : index
      %c0_17 = arith.constant 0 : index
      %21 = vector.load %arg6[%c0_16, %c0_17] : memref<2x8xf32, #tpu.memory_space<vmem>>, vector<2x8xf32>
      %cst_18 = arith.constant dense<0.000000e+00> : vector<2xf32>
      %22 = vector.multi_reduction <add>, %21, %cst_18 [1] : vector<2x8xf32> to vector<2xf32>
      %23 = vector.shape_cast %22 : vector<2xf32> to vector<1x1x2xf32>
      %c0_19 = arith.constant 0 : index
      %c0_20 = arith.constant 0 : index
      %c0_21 = arith.constant 0 : index
      %24 = vector.load %arg4[%c0_19, %c0_20, %c0_21] : memref<1x1x2xf32, #tpu.memory_space<vmem>>, vector<1x1x2xf32>
      tpu.vector_store %arg4[%c0_19, %c0_20, %c0_21], %23 {strides = array<i32>} : memref<1x1x2xf32, #tpu.memory_space<vmem>>, vector<1x1x2xf32>,
    } else {
    }
    return
  }
  func.func @transform_0(%arg0: i32, %arg1: i32) -> (i32, i32, i32) {
    %c0_i32 = arith.constant 0 : i32
    %c0_i32_0 = arith.constant 0 : i32
    %c0_i32_1 = arith.constant 0 : i32
    return %arg0, %c0_i32, %c0_i32_0 : i32, i32, i32
  }
  func.func @transform_1(%arg0: i32, %arg1: i32) -> (i32, i32, i32) {
    %c0_i32 = arith.constant 0 : i32
    %c0_i32_0 = arith.constant 0 : i32
    return %arg0, %arg1, %c0_i32 : i32, i32, i32
  }
  func.func @transform_2(%arg0: i32, %arg1: i32) -> (i32, i32, i32) {
    %c0_i32 = arith.constant 0 : i32
    %c0_i32_0 = arith.constant 0 : i32
    %c0_i32_1 = arith.constant 0 : i32
    return %arg0, %c0_i32, %c0_i32_0 : i32, i32, i32
  }
}

</mosaic_0001>

<bundles_post_ra>
// kernel: tpu_custom_call.1
= control target key start
LH: loop header
LB: loop body
LE: loop exit
PB: predicated region body
PF: predicated region fallthrough
CT: control target
= control target key end

     0   :  { %7 = vsyncpa [#allocation5], 0  ;;  %s517_s0 = inlined_call_operand.hbm [shape: f32[2,8,32], index: 0, kind: input, shape index: {}]   ;;  %s518_s1 = inlined_call_operand.hbm [shape: f32[2,16,32], index: 1, kind: input, shape index: {}]   ;;  %s519_s2 = inlined_call_operand.hbm [shape: f32[1,1,2], index: 2, kind: output, shape index: {}]  }
   0x1   :  { %8 = vsyncpa [#allocation8], 0 }
   0x2   :  { %9 = vsyncpa [#allocation6], 0  ;;  %s442_s9 = smov [#allocation4]   ;;  %s370_s13 = scalar_lea.hbm %s517_s0, 256 }
   0x3   :  { %s15_s10 = sshll.u32 %s442_s9, 4  ;;  %p371_p0 = scmp.ne.s32.totalorder %s517_s0, %s370_s13  ;;  %s16_s10 = int_to_ptr.vmem [resolvable:$true] %s15_s10 }
   0x4   :  { %p374_p1 = scmp.lt.u32.totalorder %s370_s13, %s517_s0 }
   0x6   :  { %p376_p2 = pnand %p374_p1, %p371_p0 }
   0x8   :  { %379 = shalt.err (!%p376_p2)
}
   0x9   :  { %s380_s18 = scalar_lea.vmem %s16_s10, 256  ;;  %p385_p4 = scmp.lt.s32.totalorder %s16_s10, %s16_s10 }
   0xa   :  { %p381_p3 = scmp.ne.s32.totalorder %s16_s10, %s380_s18  ;;  %p386_p5 = scmp.lt.s32.totalorder %s380_s18, %s380_s18 }
   0xc   :  { %p387_p6 = por %p386_p5, %p385_p4 }
   0xe   :  { %p388_p7 = pnand %p387_p6, %p381_p3 }
  0x10   :  { %391 = shalt.err (!%p388_p7)
}
  0x11   :  { %s443_s19 = smov 128   ;;  %s444_s20 = smov 8  }
  0x12   :  { %21 = dma.hbm_to_vmem [thread:$0]  %s517_s0, 256, %s16_s10, [#allocation5], %s443_s19, %s443_s19, %s444_s20  }
  0x13   :  { %s445_s23 = smov [#allocation7]   ;;  %s392_s27 = scalar_lea.hbm %s518_s1, 512 }
  0x14   :  { %s27_s24 = sshll.u32 %s445_s23, 4  ;;  %p393_p8 = scmp.ne.s32.totalorder %s518_s1, %s392_s27  ;;  %s28_s24 = int_to_ptr.vmem [resolvable:$true] %s27_s24 }
  0x15   :  { %p396_p9 = scmp.lt.u32.totalorder %s392_s27, %s518_s1 }
  0x17   :  { %p398_p10 = pnand %p396_p9, %p393_p8 }
  0x19   :  { %401 = shalt.err (!%p398_p10)
}
  0x1a   :  { %s402_s4 = scalar_lea.vmem %s28_s24, 512  ;;  %p407_p12 = scmp.lt.s32.totalorder %s28_s24, %s28_s24 }
  0x1b   :  { %p403_p11 = scmp.ne.s32.totalorder %s28_s24, %s402_s4  ;;  %p408_p13 = scmp.lt.s32.totalorder %s402_s4, %s402_s4 }
  0x1d   :  { %p409_p0 = por %p408_p13, %p407_p12 }
  0x1f   :  { %p410_p1 = pnand %p409_p0, %p403_p11 }
  0x21   :  { %413 = shalt.err (!%p410_p1)
}
  0x22   :  { %33 = dma.hbm_to_vmem [thread:$0]  %s518_s1, 512, %s28_s24, [#allocation8], %s443_s19, %s443_s19, %s444_s20  }
  0x23   :  { %436 = dma.done.wait [#allocation5], 256  }
  0x24   :  { %437 = vsyncadd [#allocation5], 4294967040 }
  0x25   :  { %438 = dma.done.wait [#allocation8], 512  }
  0x26   :  { %439 = vsyncadd [#allocation8], 4294966784  ;;  %vm48_vm0 = vcmask 261120   ;;  %v67_v0 = vld [vmem:[#allocation7 + $0x10] sm:$0xff]  ;;  %v65_v1 = vld [vmem:[#allocation7] sm:$0xff]  ;;  %v446_v18 = vmov 0.0|0.0   ;;  %v268_v55 = vlaneseq }
  0x27   :  { %v68_v2 = vld [vmem:[#allocation7 + $0x18] sm:$0xff]  ;;  %v71_v3 = vmul.f32 %v67_v0, %v67_v0  ;;  %v69_v4 = vmul.f32 %v65_v1, %v65_v1  ;;  %v66_v6 = vld [vmem:[#allocation7 + $0x8] sm:$0xff]  ;;  %v44_v9 = vld [vmem:[#allocation4] sm:$0xff]  ;;  %341 = vmatprep.subr.bf16.mxu0 %v446_v18  ;;  %345 = vmatprep.subr.bf16.mxu1 %v446_v18  ;;  %vm447_vm1 = vmmov 0   ;;  %v448_v19 = vmov 0.0   ;;  %s450_s1 = smov [#allocation9]  }
  0x28   :  { %v72_v5 = vmul.f32 %v68_v2, %v68_v2  ;;  %v70_v7 = vmul.f32 %v66_v6, %v66_v6  ;;  %v45_v8 = vld [vmem:[#allocation4 + $0x8] sm:$0xff]  ;;  %v46_v15 = vmul.f32 %v44_v9, %v44_v9  ;;  %331 = vmatprep.mubr.msk.f32.mxu0 %vm447_vm1, %v448_v19  ;;  %338 = vmatprep.mubr.msk.f32.mxu1 %vm447_vm1, %v448_v19  ;;  %vm343_vm2 = vmpackc.low %vm48_vm0, %vm48_vm0  ;;  %vm259_vm3 = vcmask 130048   ;;  %s305_s6 = sshll.u32 %s450_s1, 4  ;;  %s306_s6 = int_to_ptr.vmem [resolvable:$true] %s305_s6 }
  0x29   :  { %v80_v10 = vsel %vm48_vm0, %v71_v3, 0.0  ;;  %v74_v11 = vsel %vm48_vm0, %v69_v4, 0.0  ;;  %v47_v14 = vmul.f32 %v45_v8, %v45_v8  ;;  %vm63_vm4 = vcmask 58368   ;;  %s414_s7 = scalar_lea.vmem %s306_s6, 16  ;;  %s418_s8 = scalar_lea.vmem %s306_s6, 32 }
  0x2a   :  { %81 = vadd.xlane.f32.xlu1 %v80_v10  ;;  %75 = vadd.xlane.f32.xlu0 %v74_v11  ;;  %v83_v12 = vsel %vm48_vm0, %v72_v5, 0.0  ;;  %v77_v13 = vsel %vm48_vm0, %v70_v7, 0.0  ;;  %v49_v17 = vsel %vm48_vm0, %v46_v15, 0.0  ;;  %v449_v54 = vmov -3.4028235e+38   ;;  %p415_p2 = scmp.ne.s32.totalorder %s306_s6, %s414_s7  ;;  %p419_p3 = scmp.lt.s32.totalorder %s306_s6, %s306_s6 }
  0x2b   :  { %v52_v16 = vsel %vm48_vm0, %v47_v14, 0.0  ;;  %64 = vst.msk [vmem:[#allocation3] sm:$0x3] %vm63_vm4, %v449_v54  ;;  %v269_v56 = vand.u32 127, %v268_v55  ;;  %v271_v57 = vshrl.u32 %v268_v55, 7  ;;  %vm278_vm5 = vcmask 1041409   ;;  %p420_p4 = scmp.lt.s32.totalorder %s418_s8, %s414_s7 }
  0x2c   :  { %vm297_vm6 = vcmask 8192  }
  0x2d   :  { %v272_v58 = vsub.s32 %v269_v56, %v271_v57  ;;  %p421_p5 = por %p420_p4, %p419_p3 }
  0x2e   :  { %84 = vadd.xlane.f32.xlu1 %v83_v12  ;;  %78 = vadd.xlane.f32.xlu0 %v77_v13 }
  0x2f   :  { %p422_p6 = pnand %p421_p5, %p415_p2 }
  0x32   :  { %53 = vadd.xlane.f32.xlu1 %v52_v16  ;;  %50 = vadd.xlane.f32.xlu0 %v49_v17  ;;  %v258_v63 = vld [vmem:[#allocation3] sm:$0x3] }
  0xb7   :  { %v82_v20 = vpop.xlane.xlu1 %81  ;;  %v76_v21 = vpop.xlane.xlu0 %75 }
  0xb8   :  { %v88_v22 = vmax.f32 %v82_v20, 1e-24  ;;  %v86_v23 = vmax.f32 %v76_v21, 1e-24 }
  0xba   :  { %358 = vrsqrt.f32 %v88_v22 }
  0xbb   :  { %v85_v24 = vpop.xlane.xlu1 %84  ;;  %v79_v25 = vpop.xlane.xlu0 %78  ;;  %360 = vrsqrt.f32 %v86_v23 }
  0xbc   :  { %v89_v26 = vmax.f32 %v85_v24, 1e-24  ;;  %v87_v27 = vmax.f32 %v79_v25, 1e-24 }
  0xbe   :  { %362 = vrsqrt.f32 %v89_v26 }
  0xbf   :  { %364 = vrsqrt.f32 %v87_v27  ;;  %v54_v28 = vpop.xlane.xlu1 %53  ;;  %v51_v29 = vpop.xlane.xlu0 %50 }
  0xc0   :  { %v56_v30 = vmax.f32 %v54_v28, 1e-24  ;;  %v55_v31 = vmax.f32 %v51_v29, 1e-24 }
  0xc2   :  { %366 = vrsqrt.f32 %v56_v30 }
  0xc3   :  { %368 = vrsqrt.f32 %v55_v31 }
  0xc4   :  { %v359_v32 = vpop.eup %358 }
  0xc5   :  { %v361_v33 = vpop.eup %360  ;;  %v96_v36 = vmul.f32 %v359_v32, %v67_v0 }
  0xc6   :  { %v94_v38 = vmul.f32 %v361_v33, %v65_v1 }
  0xc8   :  { %v363_v34 = vpop.eup %362 }
  0xc9   :  { %v365_v35 = vpop.eup %364  ;;  %v97_v37 = vmul.f32 %v363_v34, %v68_v2 }
  0xca   :  { %v95_v39 = vmul.f32 %v365_v35, %v66_v6 }
  0xcb   :  { %v346_v40 = vpack.c.bf16 %v97_v37, %v96_v36 }
  0xcc   :  { %v367_v41 = vpop.eup %366  ;;  %v342_v42 = vpack.c.bf16 %v95_v39, %v94_v38 }
  0xcd   :  { %v369_v43 = vpop.eup %368  ;;  %v60_v44 = vmul.f32 %v367_v41, %v45_v8  ;;  %348 = vmatpush3.bf16.xpose.msk.msra.mxu1 %vm343_vm2, %v346_v40 }
  0xce   :  { %v59_v45 = vmul.f32 %v369_v43, %v44_v9  ;;  %344 = vmatpush3.bf16.xpose.msk.msra.mxu0 %vm343_vm2, %v342_v42 }
  0xcf   :  { %62 = vst.msk [vmem:[#allocation2 + $0x8] sm:$0xff] %vm48_vm0, %v60_v44 }
  0xd0   :  { %61 = vst.msk [vmem:[#allocation2] sm:$0xff] %vm48_vm0, %v59_v45 }
  0xd6   :  { %v99_v46 = vld [vmem:[#allocation2 + $0x8] sm:$0xff] }
  0xd7   :  { %v98_v47 = vld [vmem:[#allocation2] sm:$0xff]  ;;  %339 = vmatmul.mubr.msk.f32.vlgmr.msra.gmra.mrb[0].mxu1 %vm48_vm0, %v99_v46 }
  0xd8   :  { %332 = vmatmul.mubr.msk.f32.vlgmr.msra.gmra.mrb[0].mxu0 %vm48_vm0, %v98_v47 }
 0x1aa   :  { %v254_v48 = vpop.f32.mrb[0].mxu1 }
 0x1ab   :  { %v175_v49 = vpop.f32.mrb[0].mxu0  ;;  %v340_v50 = vpop.f32.mrb[1].mxu1  ;;  %v263_v51 = vsel %vm259_vm3, %v254_v48, -inf }
 0x1ac   :  { %v333_v52 = vpop.f32.mrb[1].mxu0  ;;  %264 = vmax.xlane.f32.xlu1 %v263_v51  ;;  %v260_v53 = vsel %vm259_vm3, %v175_v49, -inf }
 0x1ad   :  { %261 = vmax.xlane.f32.xlu0 %v260_v53 }
 0x239   :  { %v265_v59 = vpop.xlane.xlu1 %264 }
 0x23a   :  { %v277_v60 = vrot.slane %v265_v59, %v272_v58  ;;  %v262_v61 = vpop.xlane.xlu0 %261 }
 0x23b   :  { %v273_v62 = vrot.slane %v262_v61, %v272_v58 }
 0x23d   :  { %v279_v0 = vsel %vm278_vm5, %v277_v60, %v273_v62 }
 0x23e   :  { %v281_v1 = vmax.f32 %v258_v63, %v279_v0 }
 0x240   :  { %283 = vst.msk [vmem:[#allocation3] sm:$0x3] %vm63_vm4, %v281_v1 }
 0x247   :  { %v287_v2 = vld [vmem:[#allocation3] sm:$0x3] }
 0x248   :  { %v288_v3 = vsel %vm63_vm4, %v287_v2, 0.0 }
 0x249   :  { %289 = vadd.xlane.f32.xlu0 %v288_v3 }
 0x2d6   :  { %v290_v4 = vpop.xlane.xlu0 %289 }
 0x2d7   :  { %v295_v5 = vrot.slane %v290_v4, %v272_v58 }
 0x2d9   :  { %298 = vst.msk [vmem:[#allocation9] sm:$0x1] %vm297_vm6, %v295_v5 }
 0x2da   :  { %425 = shalt.err (!%p422_p6)
}
 0x2db   :  { %s426_s11 = scalar_lea.hbm %s519_s2, 16 }
 0x2dc   :  { %p427_p7 = scmp.ne.s32.totalorder %s519_s2, %s426_s11  ;;  %p430_p8 = scmp.lt.u32.totalorder %s426_s11, %s519_s2 }
 0x2de   :  { %p432_p9 = pnand %p430_p8, %p427_p7 }
 0x2e0   :  { %435 = shalt.err (!%p432_p9)
}
 0x2e1   :  { %308 = dma.vmem_to_hbm [thread:$0]  %s306_s6, 16, %s519_s2, [#allocation6]  }
 0x2e2   :  { %440 = dma.done.wait [#allocation6], 16  }
 0x2e3   :  { %441 = vsyncadd [#allocation6], 4294967280 }
 0x2e4   :  { %312 = vsyncpa [#allocation5], 1 }
 0x2e5   :  { %313 = vsyncpa [#allocation8], 1 }
 0x2e6   :  { %314 = vsyncpa [#allocation6], 1 }

</bundles_post_ra>
